<compile_context>
chip_gen: v7x
topology: tpu7x:2x2x1
jax: 0.10.0
libtpu: 0.0.40
codegen_flags: <defaults>
</compile_context>

<pallas_src>
import functools

import jax
import jax.numpy as jnp
from jax.experimental import pallas as pl
from jax.experimental.pallas import tpu as pltpu

_LANES = 128
_NEG_BIG = -1e30          # finite "minus infinity" used to pad logits


def _round_up(n, m):
    return (n + m - 1) // m * m


def _elr_kernel(idx_ref, y_ref,                 # scalar prefetch (SMEM)
                x_ref, tgt_ref,                 # inputs  (1, 1, Cp) VMEM
                new_tgt_ref, ce_ref, reg_ref,   # outputs
                *, beta: float, num_classes: int):
    del idx_ref                                  # only used by the index_maps
    b = pl.program_id(0)

    x = x_ref[0].astype(jnp.float32)             # (1, Cp) logits (pad = -1e30)
    tgt = tgt_ref[0].astype(jnp.float32)         # (1, Cp) EMA row (pad = 0)
    cp = x.shape[-1]

    # --- numerically stable softmax; ONE reciprocal per row (EUP-light) ---
    x_max = jnp.max(x, axis=-1, keepdims=True)                # (1, 1)
    ex = jnp.exp(x - x_max)                                   # padded lanes -> 0
    denom = jnp.sum(ex, axis=-1, keepdims=True)               # (1, 1)
    softmax = ex * pl.reciprocal(denom)                       # broadcast multiply

    # --- clamp (this is the detached y_pred_); re-zero padded lanes the clamp lifted ---
    cls_iota = jax.lax.broadcasted_iota(jnp.int32, (1, cp), 1)
    y_pred = jnp.clip(softmax, 1e-4, 1.0 - 1e-4)
    if cp != num_classes:
        y_pred = jnp.where(cls_iota < num_classes, y_pred, 0.0)

    # --- EMA update of the gathered target row (written back in place) ---
    y_pred_norm = y_pred * pl.reciprocal(
        jnp.sum(y_pred, axis=-1, keepdims=True))
    new_tgt = beta * tgt + (1.0 - beta) * y_pred_norm
    new_tgt_ref[0] = new_tgt.astype(new_tgt_ref.dtype)

    # --- cross entropy per row: logsumexp - gathered logit (no log_softmax temp) ---
    label = y_ref[b]                                           # SMEM scalar
    gathered = jnp.sum(jnp.where(cls_iota == label, x, 0.0),
                       axis=-1, keepdims=True)                 # (1, 1)
    ce_row = (x_max + jnp.log(denom)) - gathered               # (1, 1)

    # --- ELR regularizer with the UPDATED row (matches PyTorch in-place order) ---
    dot = jnp.sum(y_pred * new_tgt, axis=-1, keepdims=True)
    reg_row = jnp.log(jnp.maximum(1.0 - dot, 1e-8))            # defensive, never binds

    # lane-dense per-row partial outputs (reduced in the wrapper)
    ce_ref[0] = jnp.broadcast_to(ce_row, (1, _LANES))
    reg_ref[0] = jnp.broadcast_to(reg_row, (1, _LANES))


def elr_loss(i, x, y, target, *, beta: float, lamb: float):
    """ELR forward.

    `target` is the persistent EMA state, stored with its class axis padded to
    a multiple of 128 lanes (padded columns stay zero). Updated rows are
    written back in place via input_output_aliases.
    Returns (elr_loss, ce_loss, elr_reg, new_target).
    """
    B, C = x.shape
    ds, cp = target.shape
    assert cp == _round_up(C, _LANES), (
        "target state must have its class axis lane-padded to a multiple of 128")

    if cp != C:
        x = jnp.pad(x, ((0, 0), (0, cp - C)), constant_values=_NEG_BIG)

    x3 = x.reshape(B, 1, cp)            # keep native dtype; cast inside kernel
    tgt3 = target.reshape(ds, 1, cp)
    idx = i.astype(jnp.int32)
    lab = y.astype(jnp.int32)

    kernel = functools.partial(_elr_kernel, beta=float(beta), num_classes=C)

    grid_spec = pltpu.PrefetchScalarGridSpec(
        num_scalar_prefetch=2,          # (idx, lab) -> SMEM, feed the index_maps
        grid=(B,),
        in_specs=[
            # logits row b
            pl.BlockSpec((1, 1, cp), lambda b, idx_ref, y_ref: (b, 0, 0)),
            # gathered target row  target[i[b]]
            pl.BlockSpec((1, 1, cp), lambda b, idx_ref, y_ref: (idx_ref[b], 0, 0)),
        ],
        out_specs=(
            # scatter the updated row back to target[i[b]] (aliased buffer)
            pl.BlockSpec((1, 1, cp), lambda b, idx_ref, y_ref: (idx_ref[b], 0, 0)),
            # per-row CE / ELR partials (lane dense)
            pl.BlockSpec((1, 1, _LANES), lambda b, idx_ref, y_ref: (b, 0, 0)),
            pl.BlockSpec((1, 1, _LANES), lambda b, idx_ref, y_ref: (b, 0, 0)),
        ),
    )

    new_t3, ce_rows, reg_rows = pl.pallas_call(
        kernel,
        grid_spec=grid_spec,
        out_shape=(
            jax.ShapeDtypeStruct((ds, 1, cp), target.dtype),
            jax.ShapeDtypeStruct((B, 1, _LANES), jnp.float32),
            jax.ShapeDtypeStruct((B, 1, _LANES), jnp.float32),
        ),
        # flattened inputs are (idx, lab, x3, tgt3) -> tgt3 is index 3
        input_output_aliases={3: 0},
        compiler_params=pltpu.CompilerParams(
            dimension_semantics=("parallel",)),
    )(idx, lab, x3, tgt3)

    ce = jnp.mean(ce_rows[:, 0, 0])
    reg = jnp.mean(reg_rows[:, 0, 0])
    loss = ce + lamb * reg
    return loss, ce, reg, new_t3.reshape(ds, cp)


def _elr_loss_ref(i, x, y, target, *, beta, lamb):
    """Pure-JAX reference (unpadded) for correctness checking."""
    x = x.astype(jnp.float32)
    sm = jax.nn.softmax(x, axis=1)
    y_pred = jnp.clip(sm, 1e-4, 1.0 - 1e-4)
    tgt_rows = target[i]
    new_rows = beta * tgt_rows + (1.0 - beta) * (
        y_pred / jnp.sum(y_pred, axis=1, keepdims=True))
    logp = jax.nn.log_softmax(x, axis=1)
    ce = -jnp.mean(jnp.take_along_axis(logp, y[:, None].astype(jnp.int32), axis=1))
    reg = jnp.mean(jnp.log(1.0 - jnp.sum(y_pred * new_rows, axis=1)))
    return ce + lamb * reg, ce, reg, target.at[i].set(new_rows)


if __name__ == "__main__":
    # Small synthetic configuration (analogue of args.*).
    dataset_size = 64
    num_output = 32        # classes C
    beta = 0.7
    lamb = 3.0
    B = 8                  # batch size

    key = jax.random.PRNGKey(0)
    kx, ky, kt = jax.random.split(key, 3)

    x = jax.random.normal(kx, (B, num_output), dtype=jnp.float32)
    y = jax.random.randint(ky, (B,), 0, num_output, dtype=jnp.int32)
    i = jnp.arange(B, dtype=jnp.int32) * 3          # unique dataset indices
    # Deterministic non-zero running target state (normalized rows).
    t0 = jax.nn.softmax(jax.random.normal(kt, (dataset_size, num_output)),
                        axis=1).astype(jnp.float32)

    # Persistent EMA state is kept lane-padded (padded columns stay zero).
    cp = _round_up(num_output, _LANES)
    target_state = jnp.pad(t0, ((0, 0), (0, cp - num_output)))

    # Reference first (the kernel call may donate/alias the state buffer).
    loss_r, ce_r, reg_r, tgt_r = _elr_loss_ref(i, x, y, t0, beta=beta, lamb=lamb)

    loss, ce, reg, new_target = elr_loss(i, x, y, target_state, beta=beta, lamb=lamb)
    jax.block_until_ready((loss, ce, reg, new_target))

    # Silent correctness checks against the pure-JAX reference.
    assert jnp.allclose(loss, loss_r, atol=1e-5, rtol=1e-5)
    assert jnp.allclose(ce, ce_r, atol=1e-5, rtol=1e-5)
    assert jnp.allclose(reg, reg_r, atol=1e-5, rtol=1e-5)
    assert jnp.allclose(new_target[:, :num_output], tgt_r, atol=1e-5, rtol=1e-5)

    print("KERNEL_OK")
</pallas_src>

<mosaic_0001>
module attributes {stable_mosaic.version = 11 : i64} {
  func.func @_elr_kernel(%arg0: i32, %arg1: memref<8xi32, #tpu.memory_space<smem>>, %arg2: memref<8xi32, #tpu.memory_space<smem>>, %arg3: memref<1x1x128xf32, #tpu.memory_space<vmem>>, %arg4: memref<1x1x128xf32, #tpu.memory_space<vmem>>, %arg5: memref<1x1x128xf32, #tpu.memory_space<vmem>>, %arg6: memref<1x1x128xf32, #tpu.memory_space<vmem>>, %arg7: memref<1x1x128xf32, #tpu.memory_space<vmem>>) attributes {dimension_semantics = [#tpu.dimension_semantics<parallel>], iteration_bounds = array<i64: 8>, scalar_prefetch = 2 : i64, scratch_operands = 0 : i64, tpu.core_type = #tpu.core_type<tc>, window_params = [{transform_indices = @transform_0, window_bounds = array<i64: 1, 1, 128>}, {transform_indices = @transform_1, window_bounds = array<i64: 1, 1, 128>}, {transform_indices = @transform_2, window_bounds = array<i64: 1, 1, 128>}, {transform_indices = @transform_3, window_bounds = array<i64: 1, 1, 128>}, {transform_indices = @transform_4, window_bounds = array<i64: 1, 1, 128>}]} {
    %c0 = arith.constant 0 : index
    %c0_0 = arith.constant 0 : index
    %c0_1 = arith.constant 0 : index
    %0 = vector.load %arg3[%c0, %c0_0, %c0_1] : memref<1x1x128xf32, #tpu.memory_space<vmem>>, vector<1x1x128xf32>
    %1 = vector.shape_cast %0 : vector<1x1x128xf32> to vector<1x128xf32>
    %c0_2 = arith.constant 0 : index
    %c0_3 = arith.constant 0 : index
    %c0_4 = arith.constant 0 : index
    %2 = vector.load %arg4[%c0_2, %c0_3, %c0_4] : memref<1x1x128xf32, #tpu.memory_space<vmem>>, vector<1x1x128xf32>
    %3 = vector.shape_cast %2 : vector<1x1x128xf32> to vector<1x128xf32>
    %cst = arith.constant dense<0xFF800000> : vector<1xf32>
    %4 = vector.multi_reduction <maximumf>, %1, %cst [1] : vector<1x128xf32> to vector<1xf32>
    %5 = vector.shape_cast %4 : vector<1xf32> to vector<1x1xf32>
    %6 = vector.broadcast %5 : vector<1x1xf32> to vector<1x128xf32>
    %7 = arith.subf %1, %6 : vector<1x128xf32>
    %8 = math.exp %7 : vector<1x128xf32>
    %cst_5 = arith.constant dense<0.000000e+00> : vector<1xf32>
    %9 = vector.multi_reduction <add>, %8, %cst_5 [1] : vector<1x128xf32> to vector<1xf32>
    %10 = vector.shape_cast %9 : vector<1xf32> to vector<1x1xf32>
    %11 = tpu.reciprocal %10 : vector<1x1xf32> -> vector<1x1xf32>
    %12 = vector.broadcast %11 : vector<1x1xf32> to vector<1x128xf32>
    %13 = arith.mulf %8, %12 : vector<1x128xf32>
    %14 = tpu.iota {dimensions = array<i32: 1>} : vector<1x128xi32>
    %cst_6 = arith.constant 9.99999974E-5 : f32
    %cst_7 = arith.constant 0.999899983 : f32
    %15 = vector.broadcast %cst_6 : f32 to vector<1x128xf32>
    %16 = arith.maximumf %15, %13 : vector<1x128xf32>
    %17 = vector.broadcast %cst_7 : f32 to vector<1x128xf32>
    %18 = arith.minimumf %17, %16 : vector<1x128xf32>
    %c32_i32 = arith.constant 32 : i32
    %19 = vector.broadcast %c32_i32 : i32 to vector<1x128xi32>
    %20 = arith.cmpi slt, %14, %19 : vector<1x128xi32>
    %cst_8 = arith.constant 0.000000e+00 : f32
    %21 = vector.broadcast %cst_8 : f32 to vector<1x128xf32>
    %22 = arith.select %20, %18, %21 : vector<1x128xi1>, vector<1x128xf32>
    %cst_9 = arith.constant dense<0.000000e+00> : vector<1xf32>
    %23 = vector.multi_reduction <add>, %22, %cst_9 [1] : vector<1x128xf32> to vector<1xf32>
    %24 = vector.shape_cast %23 : vector<1xf32> to vector<1x1xf32>
    %25 = tpu.reciprocal %24 : vector<1x1xf32> -> vector<1x1xf32>
    %26 = vector.broadcast %25 : vector<1x1xf32> to vector<1x128xf32>
    %27 = arith.mulf %22, %26 : vector<1x128xf32>
    %cst_10 = arith.constant 0.699999988 : f32
    %28 = vector.broadcast %cst_10 : f32 to vector<1x128xf32>
    %29 = arith.mulf %28, %3 : vector<1x128xf32>
    %cst_11 = arith.constant 3.000000e-01 : f32
    %30 = vector.broadcast %cst_11 : f32 to vector<1x128xf32>
    %31 = arith.mulf %30, %27 : vector<1x128xf32>
    %32 = arith.addf %29, %31 : vector<1x128xf32>
    %c0_12 = arith.constant 0 : index
    %c0_13 = arith.constant 0 : index
    %c0_14 = arith.constant 0 : index
    %33 = vector.load %arg5[%c0_12, %c0_13, %c0_14] : memref<1x1x128xf32, #tpu.memory_space<vmem>>, vector<1x1x128xf32>
    %34 = vector.shape_cast %33 : vector<1x1x128xf32> to vector<1x128xf32>
    %35 = vector.shape_cast %32 : vector<1x128xf32> to vector<1x1x128xf32>
    tpu.vector_store %arg5[%c0_12, %c0_13, %c0_14], %35 {strides = array<i32>} : memref<1x1x128xf32, #tpu.memory_space<vmem>>, vector<1x1x128xf32>,
    %36 = arith.index_cast %arg0 : i32 to index
    %37 = memref.load %arg2[%36] : memref<8xi32, #tpu.memory_space<smem>>
    %38 = vector.broadcast %37 : i32 to vector<1x128xi32>
    %39 = arith.cmpi eq, %14, %38 : vector<1x128xi32>
    %cst_15 = arith.constant 0.000000e+00 : f32
    %40 = vector.broadcast %cst_15 : f32 to vector<1x128xf32>
    %41 = arith.select %39, %1, %40 : vector<1x128xi1>, vector<1x128xf32>
    %cst_16 = arith.constant dense<0.000000e+00> : vector<1xf32>
    %42 = vector.multi_reduction <add>, %41, %cst_16 [1] : vector<1x128xf32> to vector<1xf32>
    %43 = vector.shape_cast %42 : vector<1xf32> to vector<1x1xf32>
    %44 = math.log %10 : vector<1x1xf32>
    %45 = arith.addf %5, %44 : vector<1x1xf32>
    %46 = arith.subf %45, %43 : vector<1x1xf32>
    %47 = arith.mulf %22, %32 : vector<1x128xf32>
    %cst_17 = arith.constant dense<0.000000e+00> : vector<1xf32>
    %48 = vector.multi_reduction <add>, %47, %cst_17 [1] : vector<1x128xf32> to vector<1xf32>
    %49 = vector.shape_cast %48 : vector<1xf32> to vector<1x1xf32>
    %cst_18 = arith.constant 1.000000e+00 : f32
    %50 = vector.broadcast %cst_18 : f32 to vector<1x1xf32>
    %51 = arith.subf %50, %49 : vector<1x1xf32>
    %cst_19 = arith.constant 9.99999993E-9 : f32
    %52 = vector.broadcast %cst_19 : f32 to vector<1x1xf32>
    %53 = arith.maximumf %51, %52 : vector<1x1xf32>
    %54 = math.log %53 : vector<1x1xf32>
    %55 = vector.shape_cast %46 : vector<1x1xf32> to vector<1x1xf32>
    %56 = vector.broadcast %55 : vector<1x1xf32> to vector<1x128xf32>
    %c0_20 = arith.constant 0 : index
    %c0_21 = arith.constant 0 : index
    %c0_22 = arith.constant 0 : index
    %57 = vector.load %arg6[%c0_20, %c0_21, %c0_22] : memref<1x1x128xf32, #tpu.memory_space<vmem>>, vector<1x1x128xf32>
    %58 = vector.shape_cast %57 : vector<1x1x128xf32> to vector<1x128xf32>
    %59 = vector.shape_cast %56 : vector<1x128xf32> to vector<1x1x128xf32>
    tpu.vector_store %arg6[%c0_20, %c0_21, %c0_22], %59 {strides = array<i32>} : memref<1x1x128xf32, #tpu.memory_space<vmem>>, vector<1x1x128xf32>,
    %60 = vector.shape_cast %54 : vector<1x1xf32> to vector<1x1xf32>
    %61 = vector.broadcast %60 : vector<1x1xf32> to vector<1x128xf32>
    %c0_23 = arith.constant 0 : index
    %c0_24 = arith.constant 0 : index
    %c0_25 = arith.constant 0 : index
    %62 = vector.load %arg7[%c0_23, %c0_24, %c0_25] : memref<1x1x128xf32, #tpu.memory_space<vmem>>, vector<1x1x128xf32>
    %63 = vector.shape_cast %62 : vector<1x1x128xf32> to vector<1x128xf32>
    %64 = vector.shape_cast %61 : vector<1x128xf32> to vector<1x1x128xf32>
    tpu.vector_store %arg7[%c0_23, %c0_24, %c0_25], %64 {strides = array<i32>} : memref<1x1x128xf32, #tpu.memory_space<vmem>>, vector<1x1x128xf32>,
    return
  }
  func.func @transform_0(%arg0: i32, %arg1: memref<8xi32, #tpu.memory_space<smem>>, %arg2: memref<8xi32, #tpu.memory_space<smem>>) -> (i32, i32, i32) {
    %c0_i32 = arith.constant 0 : i32
    %c0_i32_0 = arith.constant 0 : i32
    %c0_i32_1 = arith.constant 0 : i32
    return %arg0, %c0_i32, %c0_i32_0 : i32, i32, i32
  }
  func.func @transform_1(%arg0: i32, %arg1: memref<8xi32, #tpu.memory_space<smem>>, %arg2: memref<8xi32, #tpu.memory_space<smem>>) -> (i32, i32, i32) {
    %0 = arith.index_cast %arg0 : i32 to index
    %1 = memref.load %arg1[%0] : memref<8xi32, #tpu.memory_space<smem>>
    %c0_i32 = arith.constant 0 : i32
    %c0_i32_0 = arith.constant 0 : i32
    %c0_i32_1 = arith.constant 0 : i32
    return %1, %c0_i32, %c0_i32_0 : i32, i32, i32
  }
  func.func @transform_2(%arg0: i32, %arg1: memref<8xi32, #tpu.memory_space<smem>>, %arg2: memref<8xi32, #tpu.memory_space<smem>>) -> (i32, i32, i32) {
    %0 = arith.index_cast %arg0 : i32 to index
    %1 = memref.load %arg1[%0] : memref<8xi32, #tpu.memory_space<smem>>
    %c0_i32 = arith.constant 0 : i32
    %c0_i32_0 = arith.constant 0 : i32
    %c0_i32_1 = arith.constant 0 : i32
    return %1, %c0_i32, %c0_i32_0 : i32, i32, i32
  }
  func.func @transform_3(%arg0: i32, %arg1: memref<8xi32, #tpu.memory_space<smem>>, %arg2: memref<8xi32, #tpu.memory_space<smem>>) -> (i32, i32, i32) {
    %c0_i32 = arith.constant 0 : i32
    %c0_i32_0 = arith.constant 0 : i32
    %c0_i32_1 = arith.constant 0 : i32
    return %arg0, %c0_i32, %c0_i32_0 : i32, i32, i32
  }
  func.func @transform_4(%arg0: i32, %arg1: memref<8xi32, #tpu.memory_space<smem>>, %arg2: memref<8xi32, #tpu.memory_space<smem>>) -> (i32, i32, i32) {
    %c0_i32 = arith.constant 0 : i32
    %c0_i32_0 = arith.constant 0 : i32
    %c0_i32_1 = arith.constant 0 : i32
    return %arg0, %c0_i32, %c0_i32_0 : i32, i32, i32
  }
}

</mosaic_0001>

<bundles_post_ra>
// kernel: tpu_custom_call.1
= control target key start
LH: loop header
LB: loop body
LE: loop exit
PB: predicated region body
PF: predicated region fallthrough
CT: control target
= control target key end

     0   :  { %s1226_s0 = inlined_call_operand.vmem [shape: s32[8], index: 0, kind: input, shape index: {}]   ;;  %s1227_s2 = inlined_call_operand.vmem [shape: f32[8,1,128], index: 2, kind: input, shape index: {}]   ;;  %s1228_s3 = inlined_call_operand.hbm [shape: f32[64,1,128], index: 3, kind: input, shape index: {}, may-alias: {3,4}]   ;;  %s1229_s4 = inlined_call_operand.hbm [shape: f32[64,1,128], index: 4, kind: output, shape index: {0}, may-alias: {3,4}]   ;;  %s1230_s5 = inlined_call_operand.hbm [shape: f32[8,1,128], index: 5, kind: output, shape index: {1}]   ;;  %s1231_s6 = inlined_call_operand.hbm [shape: f32[8,1,128], index: 6, kind: output, shape index: {2}]   ;;  %s1232_s1 = inlined_call_operand.vmem [shape: s32[8], index: 1, kind: input, shape index: {}]  }
   0x1   :  { %1242 = sst [smem:[#allocation24_spill]] %s1227_s2  ;;  %s12_s23 = sshll.u32 %s1226_s0, 4  ;;  %s13_s23 = int_to_ptr.vmem [resolvable:$true] %s12_s23 }
   0x2   :  { %1243 = sst [smem:[#allocation25_spill]] %s1228_s3  ;;  %s16_s26 = sshll.u32 %s1232_s1, 4  ;;  %s17_s26 = int_to_ptr.vmem [resolvable:$true] %s16_s26 }
   0x3   :  { %s613_s27 = scalar_lea.vmem %s13_s23, 16  ;;  %p618_p1 = scmp.lt.s32.totalorder %s13_s23, %s13_s23 }
   0x4   :  { %p614_p0 = scmp.ne.s32.totalorder %s13_s23, %s613_s27  ;;  %p619_p2 = scmp.lt.s32.totalorder %s613_s27, %s613_s27 }
   0x6   :  { %p620_p3 = por %p619_p2, %p618_p1 }
   0x8   :  { %p621_p4 = pnand %p620_p3, %p614_p0 }
   0xa   :  { %624 = shalt.err (!%p621_p4)  }
   0xb   :  { %s845_s28 = smov [#allocation3]   ;;  %s625_s29 = scalar_lea.vmem %s17_s26, 16 }
   0xc   :  { %15 = dma.vmem_to_smem %s13_s23, 16, %s845_s28, [#allocation2] }
   0xd   :  { %p626_p5 = scmp.ne.s32.totalorder %s17_s26, %s625_s29  ;;  %p630_p6 = scmp.lt.s32.totalorder %s17_s26, %s17_s26 }
   0xe   :  { %p631_p7 = scmp.lt.s32.totalorder %s625_s29, %s625_s29 }
  0x10   :  { %p632_p8 = por %p631_p7, %p630_p6 }
  0x12   :  { %p633_p9 = pnand %p632_p8, %p626_p5 }
  0x14   :  { %636 = shalt.err (!%p633_p9)  }
  0x15   :  { %s846_s0 = smov [#allocation4]  }
  0x16   :  { %19 = dma.vmem_to_smem %s17_s26, 16, %s846_s0, [#allocation2] }
  0x17   :  { %791 = dma.done.wait [#allocation2], 32 }
  0x18   :  { %792 = vsyncadd [#allocation2], 4294967264 }
  0x19   :  { %21 = sfence }
  0x1a   :  { %22 = vsyncpa [#allocation6], 0 }
  0x1b   :  { %24 = vsyncpa [#allocation6 + $0x1], 0 }
  0x1c   :  { %25 = vsyncpa [#allocation7], 0 }
  0x1d   :  { %27 = vsyncpa [#allocation7 + $0x1], 0 }
  0x1e   :  { %28 = vsyncpa [#allocation10], 0 }
  0x1f   :  { %30 = vsyncpa [#allocation10 + $0x1], 0  ;;  %s892_s1 = smov 0   ;;  %s894_s30 = smov 0  }
  0x20   :  { %s896_s7 = smov 0   ;;  %s898_s8 = smov 0  }
  0x21   :  { %s900_s9 = smov 0   ;;  %s902_s10 = smov 0  }
  0x22   :  { %s904_s11 = smov 0   ;;  %s906_s12 = smov 0  }
  0x23   :  { %s908_s13 = smov 0   ;;  %s910_s14 = smov 0  }
  0x24 LB: > { %1244 = sst [smem:[#allocation19_spill]] %s827_s10  ;;  %s941_s15 = sadd.s32 4294967295, %s843_s14   ;;  %s843_s14 = sphi %s910_s14, %s1281_s14   ;;  %s839_s13 = sphi %s908_s13, %s1273_s13   ;;  %s835_s12 = sphi %s906_s12, %s1280_s12   ;;  %s831_s11 = sphi %s904_s11, %s1279_s11   ;;  %s827_s10 = sphi %s902_s10, %s1271_s10   ;;  %s823_s9 = sphi %s900_s9, %s1278_s9   ;;  %s819_s8 = sphi %s898_s8, %s1277_s8   ;;  %s815_s7 = sphi %s896_s7, %s1276_s7   ;;  %s811_s30 = sphi %s894_s30, %s1275_s30   ;;  %s807_s1 = sphi %s892_s1, %s1274_s1  }
  0x25   : > { %1245 = sst [smem:[#allocation20_spill]] %s839_s13  ;;  %s1233_s16 = sadd.s32 4294967294, %s843_s14  }
  0x26   : > { %s945_s17 = sadd.s32 1, %s843_s14   ;;  %s66_s18 = sld [smem:[#allocation3 + %s843_s14]] }
  0x27   : > { %s67_s19 = sld [smem:[#allocation3 + %s945_s17]]  ;;  %s71_s20 = sadd.s32 1, %s839_s13 }
  0x28   : > { %p78_p10 = scmp.ne.s32.totalorder %s839_s13, %s835_s12  ;;  %p79_p11 = scmp.eq.s32.totalorder %s843_s14, 0 }
  0x29   : > { %p84_p12 = scmp.ne.s32.totalorder %s835_s12, %s831_s11  ;;  %p85_p13 = scmp.eq.s32.totalorder %s941_s15, 0 }
  0x2a   : > { %p955_p0 = por %p79_p11, %p78_p10  ;;  %s94_s22 = sld [smem:[#allocation3 + %s843_s14]] }
  0x2b   : > { %p960_p1 = por %p85_p13, %p84_p12  ;;  %s95_s24 = sld [smem:[#allocation3 + %s945_s17]] }
  0x2c   : > { %s99_s25 = sadd.s32 1, %s827_s10  ;;  %p109_p2 = scmp.ne.s32.totalorder %s827_s10, %s823_s9 }
  0x2d   : > { %s1247_s23 = scalar_select %p960_p1, 1, 0 }
  0x2e   : > { %s68_s26 = ssub.s32 %s66_s18, %s67_s19  ;;  %p110_p3 = scmp.eq.s32.totalorder %s941_s15, 7 }
  0x2f   : > { %p69_p4 = scmp.eq.s32.totalorder %s68_s26, 0  ;;  %p115_p5 = scmp.ne.s32.totalorder %s823_s9, %s819_s8 }
  0x30   : > { %p973_p6 = por %p110_p3, %p109_p2  ;;  %p979_p7 = scmp.eq.s32.totalorder %s1233_s16, 7 }
  0x31   : > { %s984_s29 = scalar_select %p69_p4, %s839_s13, %s71_s20  }
  0x32   : > { %s1248_s27 = scalar_select %p973_p6, 1, 0 }
  0x33   : > { %1250 = sst [smem:[#allocation21_spill]] %s984_s29  ;;  %s96_s0 = ssub.s32 %s94_s22, %s95_s24 }
  0x34   : > { %p988_p8 = por %p979_p7, %p115_p5  ;;  %p97_p9 = scmp.eq.s32.totalorder %s96_s0, 0 }
  0x35   : > { %s122_s18 = ssub.s32 %s843_s14, %s945_s17  ;;  %s125_s19 = sadd.s32 1, %s815_s7 }
  0x36   : > { %s1251_s11 = scalar_select %p988_p8, 1, 0 }
  0x37   : > { %p123_p10 = scmp.eq.s32.totalorder %s122_s18, 0  ;;  %p135_p11 = scmp.ne.s32.totalorder %s815_s7, %s811_s30 }
  0x38   : > { %s996_s26 = scalar_select %p97_p9, %s827_s10, %s99_s25  }
  0x39   : > { %s999_s16 = scalar_select %p123_p10, %s815_s7, %s125_s19  }
  0x3a   : > { %1252 = sst [smem:[#allocation22_spill]] %s996_s26  ;;  %p141_p12 = scmp.ne.s32.totalorder %s811_s30, %s807_s1 }
  0x3b   : > { %1253 = sst [smem:[#allocation23_spill]] %s999_s16  ;;  %p519_p13 = scmp.lt.s32.totalorder %s843_s14, 8 }
  0x3c   : > { %p1008_p2 = por %p135_p11, %p110_p3  ;;  %p1014_p4 = por %p141_p12, %p979_p7 }
  0x3d   : > { %s194_s24 = sand.u32 1, %s839_s13   ;;  %p1021_p5 = pnand %p519_p13, %p955_p0 }
  0x3e   : > { %s1254_s20 = scalar_select %p1008_p2, 1, 0 }
  0x3f   : > { %s1255_s22 = scalar_select %p1014_p4, 1, 0 }
  0x40   : > { %s491_s0 = scalar_select %p955_p0, [#allocation3], [#allocation12] }
  0x41   : > { %s492_s1 = scalar_select %p955_p0, %s843_s14, 0 }
  0x42   : > { %s1283_s0 = smov (!%p519_p13, %s491_s0), [#allocation14]  ;;  %p485_p3 = scmp.ge.s32.totalorder %s843_s14, 1 }
  0x43   : > { %s1285_s1 = smov (!%p519_p13, %s492_s1), 0  ;;  %p210_p7 = scmp.lt.s32.totalorder %s843_s14, 9 }
  0x44   : > { %s198_s18 = sld [smem:[%s1283_s0 + %s1285_s1]]  ;;  %s197_s28 = scalar_lea.vmem [#allocation5], %s194_s24 }
  0x45   : > { %s205_s19 = sshll.u32 %s197_s28, 4  ;;  %p1032_p9 = pnand %p485_p3, %p210_p7  ;;  %s1036_s19 = int_to_ptr.vmem [resolvable:$true] %s205_s19 }
  0x46   : > { %s1258_s3 = sld [smem:[#allocation25_spill]]  ;;  %s195_s0 = scalar_lea.sflag [#allocation6], %s194_s24 }
  0x47   : > { %p639_p10 = pneg %p1021_p5 }
  0x4a   : > { %s484_s13 = sshll.u32 %s198_s18, 4 }
  0x4c   : > { %s1041_s21 = scalar_lea.hbm %s1258_s3, %s484_s13  ;;  %s642_s16 = scalar_lea.hbm %s1258_s3, 1024 }
  0x4d   : > { %s637_s1 = scalar_lea.hbm %s1041_s21, 16  ;;  %p643_p13 = scmp.lt.u32.totalorder %s1041_s21, %s1258_s3 }
  0x4e   : > { %p638_p0 = scmp.ne.s32.totalorder %s1041_s21, %s637_s1  ;;  %p644_p3 = scmp.lt.u32.totalorder %s642_s16, %s637_s1 }
  0x4f   : > { %p646_p4 = scmp.lt.u32.totalorder %s637_s1, %s1041_s21 }
  0x50   : > { %p640_p11 = pnand %p639_p10, %p638_p0  ;;  %p645_p7 = por %p644_p3, %p643_p13 }
  0x52   : > { %p641_p12 = pneg %p640_p11  ;;  %p647_p8 = por %p646_p4, %p645_p7 }
  0x54   : > { %p648_p2 = pnand %p647_p8, %p641_p12 }
  0x56   : > { %651 = shalt.err (!%p648_p2)
}
  0x57   : > { %s652_s26 = scalar_lea.vmem %s1036_s19, 16  ;;  %s847_s24 = smov [#allocation5]  }
  0x58   : > { %p653_p0 = scmp.ne.s32.totalorder %s1036_s19, %s652_s26  ;;  %s657_s28 = sshll.u32 %s847_s24, 4  ;;  %s658_s28 = int_to_ptr.vmem [resolvable:$false] %s657_s28 }
  0x59   : > { %s659_s18 = scalar_lea.vmem %s658_s28, 32  ;;  %p660_p1 = scmp.lt.s32.totalorder %s1036_s19, %s658_s28 }
  0x5a   : > { %p655_p11 = pnand %p653_p0, %p639_p10  ;;  %p661_p13 = scmp.lt.s32.totalorder %s659_s18, %s652_s26 }
  0x5c   : > { %p656_p6 = pneg %p655_p11  ;;  %p662_p3 = por %p661_p13, %p660_p1 }
  0x5e   : > { %p663_p4 = pnand %p662_p3, %p656_p6 }
  0x60   : > { %666 = shalt.err (!%p663_p4)
}
  0x61   : > { %508 = dma.hbm_to_vmem [thread:$0]  (!%p1021_p5), %s1041_s21, 16, %s1036_s19, %s195_s0  }
  0x62   : > { %214 = sbr.rel (%p1032_p9) target bundleno = 769 (0x301), region = 28  ;;  %s216_s16 = sand.u32 (!%p1032_p9), 1, %s835_s12  }
  0x63   : > { %s217_s1 = scalar_lea.sflag (!%p1032_p9), [#allocation6], %s216_s16  ;;  %s1071_s10 = scalar_lea.vmem (!%p1032_p9), [#allocation5], %s216_s16 }
  0x64   : > { %p1259_p8 = scmp.ne.s32.totalorder (!%p1032_p9), %s1247_s23, 0 }
  0x69   : > { %794 = dma.done.wait (%p1259_p8), %s217_s1, 16  }
  0x6a   : > { %796 = vsyncadd (%p1259_p8), %s217_s1, 4294967280  ;;  %p253_p1 = scmp.lt.s32.totalorder %s941_s15, 7  ;;  %s1260_s2 = sld [smem:[#allocation24_spill]]  ;;  %vm260_vm0 = vcmask 1040384   ;;  %v272_v5 = vlaneseq  ;;  %v259_v25 = vld [vmem:[%s1071_s10] sm:$0x1] }
  0x6b   : > { %s287_s0 = sld [smem:[#allocation4 + %s941_s15]]  ;;  %s1239_s23 = sand.u32 1, %s811_s30   ;;  %v283_v28 = vmul.f32 0.7, %v259_v25 }
  0x6c   : > { %s254_s25 = scalar_select %p253_p1, %s941_s15, 7  ;;  %v273_v6 = vand.u32 127, %v272_v5 }
  0x6d   : > { %s246_s13 = scalar_lea.vmem [#allocation9], %s1239_s23  ;;  %s1240_s26 = sand.u32 1, %s823_s9  }
  0x6e   : > { %vm276_vm2 = vcmp.lt.s32.totalorder %v273_v6, 32  ;;  %s1094_s24 = scalar_lea.vmem [#allocation8], %s1240_s26  ;;  %p1261_p6 = scmp.ne.s32.totalorder %s1248_s27, 0 }
  0x6f   : > { %s312_s1 = sand.u32 1, %s941_s15   ;;  %s1241_s10 = sshll.u32 %s941_s15, 4 }
  0x70   : > { %s255_s29 = scalar_lea.vmem %s1260_s2, %s254_s25  ;;  %s1112_s21 = scalar_lea.hbm %s1230_s5, %s1241_s10 }
  0x71   : > { %v258_v0 = vld [vmem:[%s255_s29] sm:$0x1]  ;;  %v288_v7 = vstv %s287_s0  ;;  %s495_s28 = scalar_select %p1261_p6, [#allocation3], [#allocation13] }
  0x72   : > { %v261_v1 = vsel %vm260_vm0, %v258_v0, -inf  ;;  %vm289_vm1 = vcmp.eq.s32.totalorder %v273_v6, %v288_v7  ;;  %s496_s18 = scalar_select %p1261_p6, %s941_s15, 0 }
  0x73   : > { %262 = vmax.xlane.f32.xlu0 %v261_v1  ;;  %v290_v9 = vsel %vm289_vm1, %v258_v0, 0.0  ;;  %s343_s29 = sshll.u32 %s246_s13, 4  ;;  %s1114_s0 = scalar_lea.sflag [#allocation10], %s312_s1  ;;  %s344_s29 = int_to_ptr.vmem [resolvable:$true] %s343_s29 }
  0x74   : > { %v291_v11 = vsel %vm260_vm0, %v290_v9, 0.0  ;;  %s1103_s16 = sld [smem:[%s495_s28 + %s496_s18]]  ;;  %s667_s23 = scalar_lea.vmem %s344_s29, 16 }
  0x75   : > { %p668_p2 = scmp.ne.s32.totalorder %s344_s29, %s667_s23  ;;  %p1262_p5 = scmp.ne.s32.totalorder %s1254_s20, 0 }
  0x76   : > { %s848_s26 = smov [#allocation9]  }
  0x77   : > { %p669_p9 = pnand %p668_p2, %p1262_p5  ;;  %s671_s28 = sshll.u32 %s848_s26, 4  ;;  %s672_s28 = int_to_ptr.vmem [resolvable:$false] %s671_s28 }
  0x78   : > { %s673_s18 = scalar_lea.vmem %s672_s28, 32  ;;  %p674_p12 = scmp.lt.s32.totalorder %s344_s29, %s672_s28 }
  0x79   : > { %p670_p10 = pneg %p669_p9  ;;  %p675_p7 = scmp.lt.s32.totalorder %s673_s18, %s667_s23 }
  0x7b   : > { %p676_p0 = por %p675_p7, %p674_p12 }
  0x7d   : > { %p677_p11 = pnand %p676_p0, %p670_p10 }
 0x100   : > { %v263_v2 = vpop.xlane.xlu0 %262 }
 0x101   : > { %v264_v3 = vsub.f32 %v258_v0, %v263_v2 }
 0x103   : > { %v265_v4 = vmul.f32 1.442695, %v264_v3 }
 0x105   : > { %603 = vpow2.f32 %v265_v4 }
 0x10f   : > { %v604_v8 = vpop.eup %603 }
 0x110   : > { %v267_v10 = vsel %vm260_vm0, %v604_v8, 0.0 }
 0x111   : > { %268 = vadd.xlane.f32.xlu0 %v267_v10 }
 0x115   : > { %292 = vadd.xlane.f32.xlu0 %v291_v11 }
 0x19e   : > { %v269_v12 = vpop.xlane.xlu0 %268 }
 0x19f   : > { %605 = vrcp.f32 %v269_v12 }
 0x1a0   : > { %607 = vlog2.f32 %v269_v12 }
 0x1a2   : > { %v293_v17 = vpop.xlane.xlu0 %292 }
 0x1a9   : > { %v606_v13 = vpop.eup %605 }
 0x1aa   : > { %v608_v14 = vpop.eup %607  ;;  %v271_v15 = vmul.f32 %v606_v13, %v604_v8 }
 0x1ab   : > { %v295_v16 = vmul.f32 0.6931472, %v608_v14 }
 0x1ac   : > { %v274_v18 = vmax.f32 %v271_v15, 0.0001 }
 0x1ad   : > { %v296_v19 = vadd.f32 %v295_v16, %v263_v2 }
 0x1ae   : > { %v275_v20 = vmin.f32 %v274_v18, 0.9999 }
 0x1af   : > { %v297_v21 = vsub.f32 %v296_v19, %v293_v17 }
 0x1b0   : > { %v277_v22 = vsel %vm276_vm2, %v275_v20, 0.0 }
 0x1b1   : > { %306 = vst [vmem:[%s246_s13] sm:$0x1] %v297_v21  ;;  %v278_v23 = vsel %vm260_vm0, %v277_v22, 0.0 }
 0x1b2   : > { %279 = vadd.xlane.f32.xlu1 %v278_v23 }
 0x23f   : > { %v280_v24 = vpop.xlane.xlu1 %279 }
 0x240   : > { %609 = vrcp.f32 %v280_v24 }
 0x24a   : > { %v610_v26 = vpop.eup %609 }
 0x24b   : > { %v282_v27 = vmul.f32 %v610_v26, %v277_v22 }
 0x24d   : > { %v284_v29 = vmul.f32 0.3, %v282_v27 }
 0x24f   : > { %v285_v30 = vadd.f32 %v284_v29, %v283_v28 }
 0x251   : > { %v298_v31 = vmul.f32 %v285_v30, %v277_v22  ;;  %286 = vst [vmem:[%s1094_s24] sm:$0x1] %v285_v30 }
 0x253   : > { %v299_v32 = vsel %vm260_vm0, %v298_v31, 0.0 }
 0x254   : > { %300 = vadd.xlane.f32.xlu1 %v299_v32 }
 0x255   : > { %680 = shalt.err (!%p677_p11)
}
 0x256   : > { %s681_s13 = scalar_lea.hbm %s1112_s21, 16  ;;  %s685_s26 = scalar_lea.hbm %s1230_s5, 128 }
 0x257   : > { %p682_p13 = scmp.ne.s32.totalorder %s1112_s21, %s681_s13  ;;  %p686_p8 = scmp.lt.u32.totalorder %s1112_s21, %s1230_s5 }
 0x258   : > { %p687_p1 = scmp.lt.u32.totalorder %s685_s26, %s681_s13  ;;  %p689_p9 = scmp.lt.u32.totalorder %s681_s13, %s1112_s21 }
 0x259   : > { %p683_p3 = pnand %p682_p13, %p1262_p5 }
 0x25a   : > { %p688_p2 = por %p687_p1, %p686_p8 }
 0x25b   : > { %p684_p4 = pneg %p683_p3 }
 0x25c   : > { %p690_p10 = por %p689_p9, %p688_p2 }
 0x25e   : > { %p691_p12 = pnand %p690_p10, %p684_p4 }
 0x260   : > { %694 = shalt.err (!%p691_p12)
}
 0x261   : > { %498 = dma.vmem_to_hbm [thread:$0]  (%p1262_p5), %s344_s29, 16, %s1112_s21, %s1114_s0  }
 0x262   : > { %s486_s23 = sshll.u32 %s1103_s16, 4  ;;  %s330_s18 = sshll.u32 %s1094_s24, 4  ;;  %s331_s18 = int_to_ptr.vmem [resolvable:$true] %s330_s18 }
 0x263   : > { %s1139_s26 = scalar_lea.hbm %s1229_s4, %s486_s23  ;;  %s1263_s13 = sand.u32 1, %s823_s9  }
 0x264   : > { %s309_s19 = scalar_lea.sflag [#allocation7], %s1263_s13  ;;  %s695_s28 = scalar_lea.vmem %s331_s18, 16 }
 0x265   : > { %p696_p7 = scmp.ne.s32.totalorder %s331_s18, %s695_s28  ;;  %s849_s10 = smov [#allocation8]  }
 0x266   : > { %s699_s2 = sshll.u32 %s849_s10, 4  ;;  %s700_s2 = int_to_ptr.vmem [resolvable:$false] %s699_s2 }
 0x267   : > { %p697_p0 = pnand %p696_p7, %p1261_p6  ;;  %s701_s3 = scalar_lea.vmem %s700_s2, 32 }
 0x268   : > { %p702_p13 = scmp.lt.s32.totalorder %s331_s18, %s700_s2  ;;  %p703_p3 = scmp.lt.s32.totalorder %s701_s3, %s695_s28 }
 0x269   : > { %p698_p11 = pneg %p697_p0 }
 0x26a   : > { %p704_p4 = por %p703_p3, %p702_p13 }
 0x26c   : > { %p705_p8 = pnand %p704_p4, %p698_p11 }
 0x26e   : > { %708 = shalt.err (!%p705_p8)
}
 0x26f   : > { %s709_s24 = scalar_lea.hbm %s1139_s26, 16  ;;  %s713_s10 = scalar_lea.hbm %s1229_s4, 1024 }
 0x270   : > { %p710_p1 = scmp.ne.s32.totalorder %s1139_s26, %s709_s24  ;;  %p714_p10 = scmp.lt.u32.totalorder %s1139_s26, %s1229_s4 }
 0x271   : > { %p715_p12 = scmp.lt.u32.totalorder %s713_s10, %s709_s24  ;;  %p717_p0 = scmp.lt.u32.totalorder %s709_s24, %s1139_s26 }
 0x272   : > { %p711_p2 = pnand %p710_p1, %p1261_p6 }
 0x273   : > { %p716_p7 = por %p715_p12, %p714_p10 }
 0x274   : > { %p712_p9 = pneg %p711_p2 }
 0x275   : > { %p718_p11 = por %p717_p0, %p716_p7 }
 0x277   : > { %p719_p13 = pnand %p718_p11, %p712_p9 }
 0x279   : > { %722 = shalt.err (!%p719_p13)
}
 0x27a   : > { %497 = dma.vmem_to_hbm [thread:$0]  (%p1261_p6), %s331_s18, 16, %s1139_s26, %s309_s19  }
 0x27b   : > { %s1264_s3 = sand.u32 1, %s811_s30   ;;  %s1265_s25 = sshll.u32 %s941_s15, 4 }
 0x27c   : > { %s252_s23 = scalar_lea.vmem [#allocation11], %s1264_s3  ;;  %s1167_s24 = scalar_lea.hbm %s1231_s6, %s1265_s25 }
 0x27d   : > { %s356_s1 = sshll.u32 %s252_s23, 4  ;;  %s850_s18 = smov [#allocation11]   ;;  %s357_s1 = int_to_ptr.vmem [resolvable:$true] %s356_s1 }
 0x27e   : > { %s723_s27 = scalar_lea.vmem %s357_s1, 16  ;;  %s727_s26 = sshll.u32 %s850_s18, 4  ;;  %s728_s26 = int_to_ptr.vmem [resolvable:$false] %s727_s26 }
 0x27f   : > { %p724_p3 = scmp.ne.s32.totalorder %s357_s1, %s723_s27  ;;  %s729_s19 = scalar_lea.vmem %s728_s26, 32 }
 0x280   : > { %p730_p8 = scmp.lt.s32.totalorder %s357_s1, %s728_s26  ;;  %p731_p1 = scmp.lt.s32.totalorder %s729_s19, %s723_s27 }
 0x281   : > { %p725_p6 = pnand %p724_p3, %p1262_p5 }
 0x282   : > { %p732_p2 = por %p731_p1, %p730_p8 }
 0x283   : > { %p726_p4 = pneg %p725_p6 }
 0x285   : > { %p733_p9 = pnand %p732_p2, %p726_p4 }
 0x2e1   : > { %v301_v33 = vpop.xlane.xlu1 %300 }
 0x2e2   : > { %v302_v34 = vsub.f32 1.0, %v301_v33 }
 0x2e4   : > { %v303_v35 = vmax.f32 %v302_v34, 1e-08 }
 0x2e6   : > { %611 = vlog2.f32 %v303_v35 }
 0x2f0   : > { %v612_v36 = vpop.eup %611 }
 0x2f1   : > { %v305_v37 = vmul.f32 0.6931472, %v612_v36 }
 0x2f3   : > { %307 = vst [vmem:[%s252_s23] sm:$0x1] %v305_v37 }
 0x2f4   : > { %736 = shalt.err (!%p733_p9)
}
 0x2f5   : > { %s737_s15 = scalar_lea.hbm %s1167_s24, 16  ;;  %s741_s10 = scalar_lea.hbm %s1231_s6, 128 }
 0x2f6   : > { %p738_p10 = scmp.ne.s32.totalorder %s1167_s24, %s737_s15  ;;  %p742_p0 = scmp.lt.u32.totalorder %s1167_s24, %s1231_s6 }
 0x2f7   : > { %p743_p11 = scmp.lt.u32.totalorder %s741_s10, %s737_s15  ;;  %p745_p3 = scmp.lt.u32.totalorder %s737_s15, %s1167_s24 }
 0x2f8   : > { %p739_p12 = pnand %p738_p10, %p1262_p5 }
 0x2f9   : > { %p744_p13 = por %p743_p11, %p742_p0 }
 0x2fa   : > { %p740_p7 = pneg %p739_p12 }
 0x2fb   : > { %p746_p6 = por %p745_p3, %p744_p13 }
 0x2fd   : > { %p747_p4 = pnand %p746_p6, %p740_p7 }
 0x2ff   : > { %750 = shalt.err (!%p747_p4)
}
 0x300   : > { %499 = dma.vmem_to_hbm [thread:$0]  (%p1262_p5), %s357_s1, 16, %s1167_s24, %s1114_s0  }
 0x301 PF: > { %p520_p8 = scmp.ge.s32.totalorder %s843_s14, 2  ;;  %s368_s3 = sand.u32 1, %s819_s8  }
 0x302   : > { %p1266_p1 = scmp.ne.s32.totalorder %s1251_s11, 0  ;;  %s369_s23 = scalar_lea.sflag [#allocation7], %s368_s3 }
 0x304   : > { %p510_p2 = pnand %p520_p8, %p1266_p1 }
 0x306   : > { %798 = dma.done.wait (!%p510_p2), %s369_s23, 16  }
 0x307   : > { %800 = vsyncadd (!%p510_p2), %s369_s23, 4294967280  ;;  %s1267_s25 = sadd.s32 4294967294, %s843_s14   ;;  %p1268_p9 = scmp.ne.s32.totalorder %s1255_s22, 0 }
 0x308   : > { %s376_s13 = sand.u32 1, %s1267_s25  }
 0x309   : > { %p513_p10 = pnand %p520_p8, %p1268_p9  ;;  %s377_s20 = scalar_lea.sflag [#allocation10], %s376_s13 }
 0x30b   : > { %802 = dma.done.wait (!%p513_p10), %s377_s20, 32  }
 0x30c   : > { %804 = vsyncadd (!%p513_p10), %s377_s20, 4294967264  ;;  %s1269_s0 = sld [smem:[#allocation23_spill]]  ;;  %s1270_s28 = sld [smem:[#allocation19_spill]] }
 0x30d   : > { %s1271_s10 = sld [smem:[#allocation22_spill]]  ;;  %s1272_s24 = sld [smem:[#allocation20_spill]] }
 0x30e   : > { %s1273_s13 = sld [smem:[#allocation21_spill]]  ;;  %p33_p5 = scmp.ge.s32.totalorder %s945_s17, 10  }
 0x30f   : > { %s1274_s1 = smov %s811_s30  ;;  %s1275_s30 = smov %s815_s7 }
 0x310   : > { %s1277_s8 = smov %s823_s9  ;;  %s1279_s11 = smov %s835_s12 }
 0x311   : > { %s1281_s14 = smov %s945_s17  ;;  %35 = sbr.rel (!%p33_p5) target bundleno = 36 (0x24), region = 108 }
 0x312   : > { %s1276_s7 = smov %s1269_s0  ;;  %s1278_s9 = smov %s1270_s28 }
 0x313   : > { %s1280_s12 = smov %s1272_s24 }
 0x318   :  { %389 = vsyncpa [#allocation6], 1 }
 0x319   :  { %391 = vsyncpa [#allocation6 + $0x1], 1 }
 0x31a   :  { %392 = vsyncpa [#allocation7], 1 }
 0x31b   :  { %394 = vsyncpa [#allocation7 + $0x1], 1 }
 0x31c   :  { %395 = vsyncpa [#allocation10], 1 }
 0x31d   :  { %397 = vsyncpa [#allocation10 + $0x1], 1 }

</bundles_post_ra>
